<compile_context>
chip_gen: v7x
topology: tpu7x:2x2x1
jax: 0.10.0
libtpu: 0.0.40
codegen_flags: <defaults>
</compile_context>

<pallas_src>
import jax
import jax.numpy as jnp
from jax.experimental import pallas as pl
from jax.experimental.pallas import tpu as pltpu


def _round_up(v, m):
    return (v + m - 1) // m * m


# ------------------------------ Pallas kernel -------------------------------


def _make_fused_kernel(*, c_in_pad, c_feat, hidden, d_out, h, w, b,
                       k_col, r1, r2):
    """Builds the fused conv+pool+MLP kernel for static geometry."""
    hw = h * w
    bhw = b * hw
    inv_hw = 1.0 / hw

    def kernel(x_ref, p_ref, m_ref, out_ref, col_ref):
        # x_ref  : (c_in_pad, B*HW)   channel-major, per-image-flattened pixels
        # p_ref  : (rows, 128)        packed params [wcT|bc ; w1T|b1 ; w2T|b2]
        # m_ref  : (9, B*HW)          0/1 halo-validity mask per 3x3 tap
        # out_ref: (d_out, B)         feature-major output slab for this step
        # col_ref: (9*c_in_pad, B*HW) VMEM scratch holding the im2col slab
        x = x_ref[...]

        # ---- im2col: one lane-roll + halo-mask per tap, written once into a
        # resident scratch.  shifted[p] = x[p + off] (pltpu.roll == jnp.roll).
        for t in range(9):
            dy, dx = divmod(t, 3)
            off = (dy - 1) * w + (dx - 1)
            if off == 0:
                shifted = x
            else:
                shifted = pltpu.roll(x, shift=(-off) % bhw, axis=1)
            col_ref[t * c_in_pad:(t + 1) * c_in_pad, :] = (
                shifted * m_ref[t:t + 1, :])

        # ---- conv as ONE K = 9*c_in_pad MXU pass, bias + ReLU, (C_feat, HW)
        wc_t = p_ref[0:c_feat, 0:k_col]                         # (C_feat, K)
        bc = p_ref[0:c_feat, k_col:k_col + 1]                   # (C_feat, 1)
        y = jnp.maximum(
            jnp.dot(wc_t, col_ref[...],
                    preferred_element_type=jnp.float32) + bc, 0.0)

        # ---- global average pool per image: segmented ones-matmul on the MXU
        rows = jax.lax.broadcasted_iota(jnp.int32, (bhw, b), 0)
        cols = jax.lax.broadcasted_iota(jnp.int32, (bhw, b), 1)
        pool = jnp.where((rows >= cols * hw) & (rows < (cols + 1) * hw),
                         inv_hw, 0.0).astype(jnp.float32)        # (B*HW, B)
        rep = jnp.dot(y, pool, preferred_element_type=jnp.float32)  # (Cf, B)

        # ---- second_model MLP, feature-major (no transposes needed)
        w1_t = p_ref[r1:r1 + hidden, 0:c_feat]                  # (H1, Cf)
        b1 = p_ref[r1:r1 + hidden, c_feat:c_feat + 1]           # (H1, 1)
        w2_t = p_ref[r2:r2 + d_out, 0:hidden]                   # (Do, H1)
        b2 = p_ref[r2:r2 + d_out, hidden:hidden + 1]            # (Do, 1)
        hid = jnp.maximum(
            jnp.dot(w1_t, rep, preferred_element_type=jnp.float32) + b1, 0.0)
        out = jnp.dot(w2_t, hid, preferred_element_type=jnp.float32) + b2
        out_ref[...] = out.astype(out_ref.dtype)

    return kernel


# ------------------------------ host-side prep ------------------------------


def _pack_params(params, c_in, c_in_pad):
    """Packs all weights + biases into one lane-padded VMEM-resident block."""
    conv_w = params["conv_w"].astype(jnp.float32)         # (9*C_in, C_feat)
    c_feat = conv_w.shape[1]
    hidden = params["w1"].shape[1]
    d_out = params["w2"].shape[1]
    k_col = 9 * c_in_pad
    r1 = _round_up(c_feat, 8)
    r2 = r1 + _round_up(hidden, 8)
    n_rows = _round_up(r2 + d_out, 8)
    n_cols = _round_up(max(k_col, c_feat, hidden) + 1, 128)

    # conv weight -> (C_feat, 9*c_in_pad), tap-major / channel-padded columns
    wc = conv_w.reshape(9, c_in, c_feat)
    wc_t = jnp.zeros((c_feat, 9, c_in_pad), jnp.float32)
    wc_t = wc_t.at[:, :, :c_in].set(jnp.transpose(wc, (2, 0, 1)))
    wc_t = wc_t.reshape(c_feat, k_col)

    p = jnp.zeros((n_rows, n_cols), jnp.float32)
    p = p.at[0:c_feat, 0:k_col].set(wc_t)
    p = p.at[0:c_feat, k_col:k_col + 1].set(
        params["conv_b"].astype(jnp.float32).reshape(c_feat, 1))
    p = p.at[r1:r1 + hidden, 0:c_feat].set(params["w1"].astype(jnp.float32).T)
    p = p.at[r1:r1 + hidden, c_feat:c_feat + 1].set(
        params["b1"].astype(jnp.float32).reshape(hidden, 1))
    p = p.at[r2:r2 + d_out, 0:hidden].set(params["w2"].astype(jnp.float32).T)
    p = p.at[r2:r2 + d_out, hidden:hidden + 1].set(
        params["b2"].astype(jnp.float32).reshape(d_out, 1))
    return p, c_feat, hidden, d_out, k_col, r1, r2


def _build_tap_masks(b, h, w):
    """0/1 validity mask per 3x3 tap over the B*H*W flattened lane axis."""
    rows = jnp.arange(h)
    cols = jnp.arange(w)
    per_tap = []
    for dy in range(3):
        for dx in range(3):
            oy, ox = dy - 1, dx - 1
            rv = (rows + oy >= 0) & (rows + oy < h)
            cv = (cols + ox >= 0) & (cols + ox < w)
            m = (rv[:, None] & cv[None, :]).astype(jnp.float32)
            per_tap.append(jnp.tile(m.reshape(1, h * w), (1, b)))
    return jnp.concatenate(per_tap, axis=0)                 # (9, B*HW)


# ------------------------------ JAX wrappers ---------------------------------


def concat_models_forward(x_nchw, params, *, images_per_step=None):
    """ConcatModels.forward: second_model(repn_fn_first_model(x)), fully fused."""
    n, c_in, h, w = x_nchw.shape
    hw = h * w
    c_in_pad = _round_up(c_in, 8)

    # Grid sizing: batch images per step (amortize per-step overhead), keep
    # >= 2 parallel steps when N allows (v7x has 2 TensorCores), and cap the
    # per-step batch so double-buffered blocks stay far below v7x's 64 MiB
    # VMEM.  On v5e/v6e (1 TC) pass images_per_step=N for one fat step.
    if images_per_step is None:
        num_steps = 2 if n >= 2 else 1
        b = min(-(-n // num_steps), 32)
    else:
        b = max(1, min(images_per_step, n))
    num_steps = -(-n // b)
    n_pad = num_steps * b
    bhw = b * hw
    # Lane axis must be a multiple of 128; 16x16 images (HW=256) satisfy this.
    assert bhw % 128 == 0, "pad H*W (or batch more images/step) to x128"

    # Layout plumbing (small, pad-free): NCHW -> (C_in_pad, N_pad*HW),
    # channel-major with each step's B images contiguous along lanes.
    x_flat = x_nchw.astype(jnp.float32).reshape(n, c_in, hw)
    if n_pad != n:
        x_flat = jnp.concatenate(
            [x_flat, jnp.zeros((n_pad - n, c_in, hw), jnp.float32)], axis=0)
    x_steps = jnp.transpose(x_flat.reshape(num_steps, b, c_in, hw),
                            (0, 2, 1, 3)).reshape(num_steps, c_in, bhw)
    x_cm = jnp.zeros((num_steps, c_in_pad, bhw), jnp.float32)
    x_cm = x_cm.at[:, :c_in, :].set(x_steps)
    x_cm = jnp.transpose(x_cm, (1, 0, 2)).reshape(c_in_pad, num_steps * bhw)

    packed, c_feat, hidden, d_out, k_col, r1, r2 = _pack_params(
        params, c_in, c_in_pad)
    masks = _build_tap_masks(b, h, w)

    kernel = _make_fused_kernel(
        c_in_pad=c_in_pad, c_feat=c_feat, hidden=hidden, d_out=d_out,
        h=h, w=w, b=b, k_col=k_col, r1=r1, r2=r2)

    out3 = pl.pallas_call(
        kernel,
        out_shape=jax.ShapeDtypeStruct((num_steps, d_out, b), jnp.float32),
        grid=(num_steps,),
        in_specs=[
            # Per-step lane-dense pixel slab (8 sublanes x B*256 lanes).
            pl.BlockSpec((c_in_pad, bhw), lambda i: (0, i)),
            # Packed params + tap masks: constant block index -> VMEM-resident.
            pl.BlockSpec(packed.shape, lambda i: (0, 0)),
            pl.BlockSpec(masks.shape, lambda i: (0, 0)),
        ],
        out_specs=pl.BlockSpec((None, d_out, b), lambda i: (i, 0, 0)),
        scratch_shapes=[pltpu.VMEM((9 * c_in_pad, bhw), jnp.float32)],
        compiler_params=pltpu.CompilerParams(
            dimension_semantics=("parallel",),
            vmem_limit_bytes=32 * 1024 * 1024),
    )(x_cm, packed, masks)

    # (num_steps, D_out, B) -> (N, D_out)
    out = jnp.transpose(out3, (0, 2, 1)).reshape(n_pad, d_out)
    return out[:n]


def concat_models_repn_fn(x_nchw, params, key=None):
    # ConcatModels.repn_fn: identical to forward.
    return concat_models_forward(x_nchw, params)


# ---------------------- pure-JAX reference (test only) -----------------------


def im2col_3x3_same(x_nhwc):
    n, h, w, c = x_nhwc.shape
    xp = jnp.pad(x_nhwc, ((0, 0), (1, 1), (1, 1), (0, 0)))
    patches = [xp[:, dy:dy + h, dx:dx + w, :]
               for dy in range(3) for dx in range(3)]
    p = jnp.concatenate(patches, axis=-1)           # (N, H, W, 9*C)
    return p.reshape(n * h * w, 9 * c)


def reference_forward(x_nchw, params):
    n, _, h, w = x_nchw.shape
    x_nhwc = jnp.transpose(x_nchw, (0, 2, 3, 1))
    patches = im2col_3x3_same(x_nhwc)
    y = jnp.maximum(patches @ params["conv_w"] + params["conv_b"], 0.0)
    rep = jnp.mean(y.reshape(n, h * w, -1), axis=1)
    hid = jnp.maximum(rep @ params["w1"] + params["b1"], 0.0)
    return hid @ params["w2"] + params["b2"]


if __name__ == "__main__":
    N, C_IN, H, W = 2, 4, 16, 16
    C_FEAT, HIDDEN, D_OUT = 8, 32, 16

    key = jax.random.PRNGKey(0)
    kx, kcw, kcb, kw1, kb1, kw2, kb2 = jax.random.split(key, 7)

    x = jax.random.normal(kx, (N, C_IN, H, W), dtype=jnp.float32)
    params = {
        "conv_w": 0.1 * jax.random.normal(kcw, (9 * C_IN, C_FEAT), jnp.float32),
        "conv_b": 0.1 * jax.random.normal(kcb, (1, C_FEAT), jnp.float32),
        "w1": 0.1 * jax.random.normal(kw1, (C_FEAT, HIDDEN), jnp.float32),
        "b1": 0.1 * jax.random.normal(kb1, (1, HIDDEN), jnp.float32),
        "w2": 0.1 * jax.random.normal(kw2, (HIDDEN, D_OUT), jnp.float32),
        "b2": 0.1 * jax.random.normal(kb2, (1, D_OUT), jnp.float32),
    }

    out = jax.jit(concat_models_forward)(x, params)
    out = jax.block_until_ready(out)

    ref = reference_forward(x, params)
    assert out.shape == (N, D_OUT)
    assert jnp.allclose(out, ref, atol=1e-4, rtol=1e-4)

    print("KERNEL_OK")
</pallas_src>

<mosaic_0001>
module attributes {stable_mosaic.version = 11 : i64} {
  func.func @kernel(%arg0: i32, %arg1: memref<8x256xf32, #tpu.memory_space<vmem>>, %arg2: memref<56x128xf32, #tpu.memory_space<vmem>>, %arg3: memref<9x256xf32, #tpu.memory_space<vmem>>, %arg4: memref<1x16x1xf32, #tpu.memory_space<vmem>>, %arg5: memref<72x256xf32, #tpu.memory_space<vmem>>) attributes {dimension_semantics = [#tpu.dimension_semantics<parallel>], iteration_bounds = array<i64: 2>, scalar_prefetch = 0 : i64, scratch_operands = 1 : i64, tpu.core_type = #tpu.core_type<tc>, window_params = [{transform_indices = @transform_0, window_bounds = array<i64: 8, 256>}, {pipeline_mode = #tpu.pipeline_mode<synchronous>, transform_indices = @transform_1, window_bounds = array<i64: 56, 128>}, {pipeline_mode = #tpu.pipeline_mode<synchronous>, transform_indices = @transform_2, window_bounds = array<i64: 9, 256>}, {transform_indices = @transform_3, window_bounds = array<i64: 1, 16, 1>}]} {
    %c0 = arith.constant 0 : index
    %c0_0 = arith.constant 0 : index
    %0 = vector.load %arg1[%c0, %c0_0] : memref<8x256xf32, #tpu.memory_space<vmem>>, vector<8x256xf32>
    %c17_i32 = arith.constant 17 : i32
    %1 = tpu.dynamic_rotate %0 by %c17_i32 dim 1 : vector<8x256xf32>, i32 -> vector<8x256xf32>
    %c0_1 = arith.constant 0 : index
    %c0_2 = arith.constant 0 : index
    %2 = vector.load %arg3[%c0_1, %c0_2] : memref<9x256xf32, #tpu.memory_space<vmem>>, vector<1x256xf32>
    %3 = vector.broadcast %2 : vector<1x256xf32> to vector<8x256xf32>
    %4 = arith.mulf %1, %3 : vector<8x256xf32>
    %c0_3 = arith.constant 0 : index
    %c0_4 = arith.constant 0 : index
    %5 = vector.load %arg5[%c0_3, %c0_4] : memref<72x256xf32, #tpu.memory_space<vmem>>, vector<8x256xf32>
    tpu.vector_store %arg5[%c0_3, %c0_4], %4 {strides = array<i32>} : memref<72x256xf32, #tpu.memory_space<vmem>>, vector<8x256xf32>,
    %c16_i32 = arith.constant 16 : i32
    %6 = tpu.dynamic_rotate %0 by %c16_i32 dim 1 : vector<8x256xf32>, i32 -> vector<8x256xf32>
    %c1 = arith.constant 1 : index
    %c0_5 = arith.constant 0 : index
    %7 = vector.load %arg3[%c1, %c0_5] : memref<9x256xf32, #tpu.memory_space<vmem>>, vector<1x256xf32>
    %8 = vector.broadcast %7 : vector<1x256xf32> to vector<8x256xf32>
    %9 = arith.mulf %6, %8 : vector<8x256xf32>
    %c8 = arith.constant 8 : index
    %c0_6 = arith.constant 0 : index
    %10 = vector.load %arg5[%c8, %c0_6] : memref<72x256xf32, #tpu.memory_space<vmem>>, vector<8x256xf32>
    tpu.vector_store %arg5[%c8, %c0_6], %9 {strides = array<i32>} : memref<72x256xf32, #tpu.memory_space<vmem>>, vector<8x256xf32>,
    %c15_i32 = arith.constant 15 : i32
    %11 = tpu.dynamic_rotate %0 by %c15_i32 dim 1 : vector<8x256xf32>, i32 -> vector<8x256xf32>
    %c2 = arith.constant 2 : index
    %c0_7 = arith.constant 0 : index
    %12 = vector.load %arg3[%c2, %c0_7] : memref<9x256xf32, #tpu.memory_space<vmem>>, vector<1x256xf32>
    %13 = vector.broadcast %12 : vector<1x256xf32> to vector<8x256xf32>
    %14 = arith.mulf %11, %13 : vector<8x256xf32>
    %c16 = arith.constant 16 : index
    %c0_8 = arith.constant 0 : index
    %15 = vector.load %arg5[%c16, %c0_8] : memref<72x256xf32, #tpu.memory_space<vmem>>, vector<8x256xf32>
    tpu.vector_store %arg5[%c16, %c0_8], %14 {strides = array<i32>} : memref<72x256xf32, #tpu.memory_space<vmem>>, vector<8x256xf32>,
    %c1_i32 = arith.constant 1 : i32
    %16 = tpu.dynamic_rotate %0 by %c1_i32 dim 1 : vector<8x256xf32>, i32 -> vector<8x256xf32>
    %c3 = arith.constant 3 : index
    %c0_9 = arith.constant 0 : index
    %17 = vector.load %arg3[%c3, %c0_9] : memref<9x256xf32, #tpu.memory_space<vmem>>, vector<1x256xf32>
    %18 = vector.broadcast %17 : vector<1x256xf32> to vector<8x256xf32>
    %19 = arith.mulf %16, %18 : vector<8x256xf32>
    %c24 = arith.constant 24 : index
    %c0_10 = arith.constant 0 : index
    %20 = vector.load %arg5[%c24, %c0_10] : memref<72x256xf32, #tpu.memory_space<vmem>>, vector<8x256xf32>
    tpu.vector_store %arg5[%c24, %c0_10], %19 {strides = array<i32>} : memref<72x256xf32, #tpu.memory_space<vmem>>, vector<8x256xf32>,
    %c4 = arith.constant 4 : index
    %c0_11 = arith.constant 0 : index
    %21 = vector.load %arg3[%c4, %c0_11] : memref<9x256xf32, #tpu.memory_space<vmem>>, vector<1x256xf32>
    %22 = vector.broadcast %21 : vector<1x256xf32> to vector<8x256xf32>
    %23 = arith.mulf %0, %22 : vector<8x256xf32>
    %c32 = arith.constant 32 : index
    %c0_12 = arith.constant 0 : index
    %24 = vector.load %arg5[%c32, %c0_12] : memref<72x256xf32, #tpu.memory_space<vmem>>, vector<8x256xf32>
    tpu.vector_store %arg5[%c32, %c0_12], %23 {strides = array<i32>} : memref<72x256xf32, #tpu.memory_space<vmem>>, vector<8x256xf32>,
    %c255_i32 = arith.constant 255 : i32
    %25 = tpu.dynamic_rotate %0 by %c255_i32 dim 1 : vector<8x256xf32>, i32 -> vector<8x256xf32>
    %c5 = arith.constant 5 : index
    %c0_13 = arith.constant 0 : index
    %26 = vector.load %arg3[%c5, %c0_13] : memref<9x256xf32, #tpu.memory_space<vmem>>, vector<1x256xf32>
    %27 = vector.broadcast %26 : vector<1x256xf32> to vector<8x256xf32>
    %28 = arith.mulf %25, %27 : vector<8x256xf32>
    %c40 = arith.constant 40 : index
    %c0_14 = arith.constant 0 : index
    %29 = vector.load %arg5[%c40, %c0_14] : memref<72x256xf32, #tpu.memory_space<vmem>>, vector<8x256xf32>
    tpu.vector_store %arg5[%c40, %c0_14], %28 {strides = array<i32>} : memref<72x256xf32, #tpu.memory_space<vmem>>, vector<8x256xf32>,
    %c241_i32 = arith.constant 241 : i32
    %30 = tpu.dynamic_rotate %0 by %c241_i32 dim 1 : vector<8x256xf32>, i32 -> vector<8x256xf32>
    %c6 = arith.constant 6 : index
    %c0_15 = arith.constant 0 : index
    %31 = vector.load %arg3[%c6, %c0_15] : memref<9x256xf32, #tpu.memory_space<vmem>>, vector<1x256xf32>
    %32 = vector.broadcast %31 : vector<1x256xf32> to vector<8x256xf32>
    %33 = arith.mulf %30, %32 : vector<8x256xf32>
    %c48 = arith.constant 48 : index
    %c0_16 = arith.constant 0 : index
    %34 = vector.load %arg5[%c48, %c0_16] : memref<72x256xf32, #tpu.memory_space<vmem>>, vector<8x256xf32>
    tpu.vector_store %arg5[%c48, %c0_16], %33 {strides = array<i32>} : memref<72x256xf32, #tpu.memory_space<vmem>>, vector<8x256xf32>,
    %c240_i32 = arith.constant 240 : i32
    %35 = tpu.dynamic_rotate %0 by %c240_i32 dim 1 : vector<8x256xf32>, i32 -> vector<8x256xf32>
    %c7 = arith.constant 7 : index
    %c0_17 = arith.constant 0 : index
    %36 = vector.load %arg3[%c7, %c0_17] : memref<9x256xf32, #tpu.memory_space<vmem>>, vector<1x256xf32>
    %37 = vector.broadcast %36 : vector<1x256xf32> to vector<8x256xf32>
    %38 = arith.mulf %35, %37 : vector<8x256xf32>
    %c56 = arith.constant 56 : index
    %c0_18 = arith.constant 0 : index
    %39 = vector.load %arg5[%c56, %c0_18] : memref<72x256xf32, #tpu.memory_space<vmem>>, vector<8x256xf32>
    tpu.vector_store %arg5[%c56, %c0_18], %38 {strides = array<i32>} : memref<72x256xf32, #tpu.memory_space<vmem>>, vector<8x256xf32>,
    %c239_i32 = arith.constant 239 : i32
    %40 = tpu.dynamic_rotate %0 by %c239_i32 dim 1 : vector<8x256xf32>, i32 -> vector<8x256xf32>
    %c8_19 = arith.constant 8 : index
    %c0_20 = arith.constant 0 : index
    %41 = vector.load %arg3[%c8_19, %c0_20] : memref<9x256xf32, #tpu.memory_space<vmem>>, vector<1x256xf32>
    %42 = vector.broadcast %41 : vector<1x256xf32> to vector<8x256xf32>
    %43 = arith.mulf %40, %42 : vector<8x256xf32>
    %c64 = arith.constant 64 : index
    %c0_21 = arith.constant 0 : index
    %44 = vector.load %arg5[%c64, %c0_21] : memref<72x256xf32, #tpu.memory_space<vmem>>, vector<8x256xf32>
    tpu.vector_store %arg5[%c64, %c0_21], %43 {strides = array<i32>} : memref<72x256xf32, #tpu.memory_space<vmem>>, vector<8x256xf32>,
    %c0_22 = arith.constant 0 : index
    %c0_23 = arith.constant 0 : index
    %45 = vector.load %arg2[%c0_22, %c0_23] : memref<56x128xf32, #tpu.memory_space<vmem>>, vector<8x72xf32>
    %c0_24 = arith.constant 0 : index
    %c72 = arith.constant 72 : index
    %46 = vector.load %arg2[%c0_24, %c72] : memref<56x128xf32, #tpu.memory_space<vmem>>, vector<8x1xf32>
    %c0_25 = arith.constant 0 : index
    %c0_26 = arith.constant 0 : index
    %47 = vector.load %arg5[%c0_25, %c0_26] : memref<72x256xf32, #tpu.memory_space<vmem>>, vector<72x256xf32>
    %cst = arith.constant dense<0.000000e+00> : vector<8x256xf32>
    %48 = tpu.matmul %45, %47, %cst {dimension_numbers = #tpu.dot_dimension_numbers<[1], [0], [0], [1], [0, 0, 1, 1], [], []>} : vector<8x72xf32>, vector<72x256xf32>, vector<8x256xf32> -> vector<8x256xf32>
    %49 = vector.broadcast %46 : vector<8x1xf32> to vector<8x256xf32>
    %50 = arith.addf %48, %49 : vector<8x256xf32>
    %cst_27 = arith.constant 0.000000e+00 : f32
    %51 = vector.broadcast %cst_27 : f32 to vector<8x256xf32>
    %52 = arith.maximumf %50, %51 : vector<8x256xf32>
    %53 = tpu.iota {dimensions = array<i32: 0>} : vector<256x1xi32>
    %54 = tpu.iota {dimensions = array<i32: 1>} : vector<256x1xi32>
    %c256_i32 = arith.constant 256 : i32
    %55 = vector.broadcast %c256_i32 : i32 to vector<256x1xi32>
    %56 = arith.muli %54, %55 : vector<256x1xi32>
    %57 = arith.cmpi sge, %53, %56 : vector<256x1xi32>
    %c1_i32_28 = arith.constant 1 : i32
    %58 = vector.broadcast %c1_i32_28 : i32 to vector<256x1xi32>
    %59 = arith.addi %54, %58 : vector<256x1xi32>
    %c256_i32_29 = arith.constant 256 : i32
    %60 = vector.broadcast %c256_i32_29 : i32 to vector<256x1xi32>
    %61 = arith.muli %59, %60 : vector<256x1xi32>
    %62 = arith.cmpi slt, %53, %61 : vector<256x1xi32>
    %63 = arith.andi %57, %62 : vector<256x1xi1>
    %cst_30 = arith.constant 3.906250e-03 : f32
    %cst_31 = arith.constant 0.000000e+00 : f32
    %64 = vector.broadcast %cst_30 : f32 to vector<256x1xf32>
    %65 = vector.broadcast %cst_31 : f32 to vector<256x1xf32>
    %66 = arith.select %63, %64, %65 : vector<256x1xi1>, vector<256x1xf32>
    %cst_32 = arith.constant dense<0.000000e+00> : vector<8x1xf32>
    %67 = tpu.matmul %52, %66, %cst_32 {dimension_numbers = #tpu.dot_dimension_numbers<[1], [0], [0], [1], [0, 0, 1, 1], [], []>} : vector<8x256xf32>, vector<256x1xf32>, vector<8x1xf32> -> vector<8x1xf32>
    %c8_33 = arith.constant 8 : index
    %c0_34 = arith.constant 0 : index
    %68 = vector.load %arg2[%c8_33, %c0_34] : memref<56x128xf32, #tpu.memory_space<vmem>>, vector<32x8xf32>
    %c8_35 = arith.constant 8 : index
    %c8_36 = arith.constant 8 : index
    %69 = vector.load %arg2[%c8_35, %c8_36] : memref<56x128xf32, #tpu.memory_space<vmem>>, vector<32x1xf32>
    %c40_37 = arith.constant 40 : index
    %c0_38 = arith.constant 0 : index
    %70 = vector.load %arg2[%c40_37, %c0_38] : memref<56x128xf32, #tpu.memory_space<vmem>>, vector<16x32xf32>
    %c40_39 = arith.constant 40 : index
    %c32_40 = arith.constant 32 : index
    %71 = vector.load %arg2[%c40_39, %c32_40] : memref<56x128xf32, #tpu.memory_space<vmem>>, vector<16x1xf32>
    %cst_41 = arith.constant dense<0.000000e+00> : vector<32x1xf32>
    %72 = tpu.matmul %68, %67, %cst_41 {dimension_numbers = #tpu.dot_dimension_numbers<[1], [0], [0], [1], [0, 0, 1, 1], [], []>} : vector<32x8xf32>, vector<8x1xf32>, vector<32x1xf32> -> vector<32x1xf32>
    %73 = arith.addf %72, %69 : vector<32x1xf32>
    %cst_42 = arith.constant 0.000000e+00 : f32
    %74 = vector.broadcast %cst_42 : f32 to vector<32x1xf32>
    %75 = arith.maximumf %73, %74 : vector<32x1xf32>
    %cst_43 = arith.constant dense<0.000000e+00> : vector<16x1xf32>
    %76 = tpu.matmul %70, %75, %cst_43 {dimension_numbers = #tpu.dot_dimension_numbers<[1], [0], [0], [1], [0, 0, 1, 1], [], []>} : vector<16x32xf32>, vector<32x1xf32>, vector<16x1xf32> -> vector<16x1xf32>
    %77 = arith.addf %76, %71 : vector<16x1xf32>
    %c0_44 = arith.constant 0 : index
    %c0_45 = arith.constant 0 : index
    %c0_46 = arith.constant 0 : index
    %78 = vector.load %arg4[%c0_44, %c0_45, %c0_46] : memref<1x16x1xf32, #tpu.memory_space<vmem>>, vector<1x16x1xf32>
    %79 = vector.shape_cast %78 : vector<1x16x1xf32> to vector<16x1xf32>
    %80 = vector.shape_cast %77 : vector<16x1xf32> to vector<1x16x1xf32>
    tpu.vector_store %arg4[%c0_44, %c0_45, %c0_46], %80 {strides = array<i32>} : memref<1x16x1xf32, #tpu.memory_space<vmem>>, vector<1x16x1xf32>,
    return
  }
  func.func @transform_0(%arg0: i32) -> (i32, i32) {
    %c0_i32 = arith.constant 0 : i32
    %c0_i32_0 = arith.constant 0 : i32
    return %c0_i32, %arg0 : i32, i32
  }
  func.func @transform_1(%arg0: i32) -> (i32, i32) {
    %c0_i32 = arith.constant 0 : i32
    %c0_i32_0 = arith.constant 0 : i32
    %c0_i32_1 = arith.constant 0 : i32
    return %c0_i32, %c0_i32_0 : i32, i32
  }
  func.func @transform_2(%arg0: i32) -> (i32, i32) {
    %c0_i32 = arith.constant 0 : i32
    %c0_i32_0 = arith.constant 0 : i32
    %c0_i32_1 = arith.constant 0 : i32
    return %c0_i32, %c0_i32_0 : i32, i32
  }
  func.func @transform_3(%arg0: i32) -> (i32, i32, i32) {
    %c0_i32 = arith.constant 0 : i32
    %c0_i32_0 = arith.constant 0 : i32
    %c0_i32_1 = arith.constant 0 : i32
    return %arg0, %c0_i32, %c0_i32_0 : i32, i32, i32
  }
}

</mosaic_0001>

<bundles_post_ra>
// kernel: concat_models_forward.1
= control target key start
LH: loop header
LB: loop body
LE: loop exit
PB: predicated region body
PF: predicated region fallthrough
CT: control target
= control target key end

     0   :  { %s1228_s12 = smov 0   ;;  %s1501_s0 = inlined_call_operand.vmem [shape: f32[8,512], index: 0, kind: input, shape index: {}]   ;;  %s1502_s1 = inlined_call_operand.vmem [shape: f32[56,128], index: 1, kind: input, shape index: {}]   ;;  %s1503_s2 = inlined_call_operand.vmem [shape: f32[9,256], index: 2, kind: input, shape index: {}]   ;;  %s1504_s3 = inlined_call_operand.vmem [shape: f32[2,16,1], index: 3, kind: output, shape index: {}]  }
   0x1 LB: > { %s1234_s13 = sadd.s32 4294967295, %s1193_s12   ;;  %p989_p0 = scmp.ge.s32.totalorder %s1193_s12, 1  ;;  %s1193_s12 = sphi %s1228_s12, %s13_s12  }
   0x2   : > { %p138_p1 = scmp.lt.s32.totalorder %s1193_s12, 3 }
   0x4   : > { %p139_p2 = pnand %p989_p0, %p138_p1 }
   0x5   : > { %s990_s14 = sshll.u32 (!%p139_p2), %s1234_s13, 1  ;;  %s1195_s19 = smov (!%p139_p2), 16   ;;  %v179_v2 = vlaneseq (!%p139_p2)  ;;  %v1201_v8 = vmov (!%p139_p2), 0.0   ;;  %v1202_v11 = vmov (!%p139_p2), 72   ;;  %v1205_v19 = vmov (!%p139_p2), 0.00390625|0.00390625  }
   0x6   : > { %142 = sbr.rel (%p139_p2) target bundleno = 1045 (0x415), region = 32  ;;  %p163_p3 = scmp.lt.s32.totalorder (!%p139_p2), %s990_s14, 3  ;;  %476 = vmatprep.mubr.f32.mxu0 (!%p139_p2), %v1201_v8  ;;  %1186 = vset.pattern.permute.xlu0 (!%p139_p2), %v1202_v11  ;;  %v1314_v22 = vld [vmem:[%s1502_s1] sm:$0xff] (!%p139_p2) }
   0x7   : > { %s1196_s20 = smov (!%p139_p2), 17   ;;  %s1197_s21 = smov (!%p139_p2), 15   ;;  %v1254_v3 = vand.u32 (!%p139_p2), 127, %v179_v2  ;;  %v1266_v7 = vshrl.u32 (!%p139_p2), %v179_v2, 7 }
   0x8   : > { %s1198_s22 = smov (!%p139_p2), 1   ;;  %s1199_s23 = smov (!%p139_p2), 127   ;;  %v994_v43 = vld [vmem:[%s1503_s2 + $0x1] ss:$8 sm:$0x3] (!%p139_p2) }
   0x9   : > { %v551_v4 = vadd.s32 (!%p139_p2), 1, %v1254_v3  ;;  %v1260_v5 = vmul.u32 (!%p139_p2), 256, %v1254_v3  ;;  %s1200_s24 = smov (!%p139_p2), 113   ;;  %v502_v9 = vadd.s32 (!%p139_p2), 128, %v1266_v7  ;;  %v503_v10 = vadd.s32 (!%p139_p2), 136, %v1266_v7  ;;  %s1203_s25 = smov (!%p139_p2), 112  }
   0xa   : > { %v487_v12 = vadd.s32 (!%p139_p2), 8, %v1266_v7  ;;  %v504_v13 = vadd.s32 (!%p139_p2), 144, %v1266_v7  ;;  %v505_v15 = vadd.s32 (!%p139_p2), 152, %v1266_v7  ;;  %v488_v17 = vadd.s32 (!%p139_p2), 16, %v1266_v7  ;;  %s1204_s26 = smov (!%p139_p2), 111   ;;  %s1207_s8 = smov (!%p139_p2), 96  }
   0xb   : > { %v1262_v6 = vmul.u32 (!%p139_p2), 256, %v551_v4  ;;  %vm519_vm0 = vcmp.ge.s32.totalorder (!%p139_p2), %v1266_v7, %v1260_v5  ;;  %vm535_vm2 = vcmp.ge.s32.totalorder (!%p139_p2), %v502_v9, %v1260_v5  ;;  %vm536_vm3 = vcmp.ge.s32.totalorder (!%p139_p2), %v503_v10, %v1260_v5  ;;  %v184_v44 = vld [vmem:[%s1503_s2] ss:$8 sm:$0x3] (!%p139_p2)  ;;  %p168_p4 = scmp.lt.s32.totalorder (!%p139_p2), %s1234_s13, 1 }
   0xc   : > { %vm520_vm8 = vcmp.ge.s32.totalorder (!%p139_p2), %v487_v12, %v1260_v5  ;;  %vm537_vm12 = vcmp.ge.s32.totalorder (!%p139_p2), %v504_v13, %v1260_v5  ;;  %v489_v18 = vadd.s32 (!%p139_p2), 24, %v1266_v7  ;;  %vm538_vm15 = vcmp.ge.s32.totalorder (!%p139_p2), %v505_v15, %v1260_v5  ;;  %v995_v59 = vld [vmem:[%s1503_s2 + $0x2] ss:$8 sm:$0x3] (!%p139_p2) }
   0xd   : > { %s1510_s14 = smov (!%p163_p3, %s990_s14), 3  ;;  %vm553_vm1 = vcmp.lt.s32.totalorder %v1266_v7, %v1262_v6  ;;  %vm569_vm4 = vcmp.lt.s32.totalorder %v502_v9, %v1262_v6  ;;  %vm570_vm6 = vcmp.lt.s32.totalorder %v503_v10, %v1262_v6  ;;  %vm554_vm9 = vcmp.lt.s32.totalorder %v487_v12, %v1262_v6  ;;  %v996_v62 = vld [vmem:[%s1503_s2 + $0x3] ss:$8 sm:$0x3]  ;;  %s1512_s13 = smov (!%p168_p4, %s1234_s13), 1 }
   0xe   : > { %s991_s15 = sshll.u32 %s1510_s14, 3  ;;  %vm1281_vm5 = vmand %vm519_vm0, %vm553_vm1  ;;  %vm571_vm13 = vcmp.lt.s32.totalorder %v504_v13, %v1262_v6  ;;  %vm572_vm0 = vcmp.lt.s32.totalorder %v505_v15, %v1262_v6  ;;  %v506_v20 = vadd.s32 160, %v1266_v7  ;;  %v507_v21 = vadd.s32 168, %v1266_v7  ;;  %v997_v10 = vld [vmem:[%s1503_s2 + $0x4] ss:$8 sm:$0x3] }
   0xf   : > { %s166_s18 = scalar_lea.vmem %s1501_s0, %s991_s15  ;;  %vm1287_vm7 = vmand %vm535_vm2, %vm569_vm4  ;;  %vm555_vm4 = vcmp.lt.s32.totalorder %v488_v17, %v1262_v6  ;;  %v490_v23 = vadd.s32 32, %v1266_v7  ;;  %v491_v24 = vadd.s32 40, %v1266_v7  ;;  %v508_v25 = vadd.s32 176, %v1266_v7  ;;  %v998_v14 = vld [vmem:[%s1503_s2 + $0x5] ss:$8 sm:$0x3] }
  0x10   : > { %v1242_v0 = vld [vmem:[%s166_s18] sm:$0xff]  ;;  %v1246_v1 = vld [vmem:[%s166_s18 + $0x8] sm:$0xff]  ;;  %vm602_vm10 = vmand %vm536_vm3, %vm570_vm6  ;;  %vm521_vm3 = vcmp.ge.s32.totalorder %v488_v17, %v1260_v5  ;;  %v509_v26 = vadd.s32 184, %v1266_v7  ;;  %v492_v27 = vadd.s32 48, %v1266_v7  ;;  %v493_v28 = vadd.s32 56, %v1266_v7  ;;  %s1043_s9 = sshll.u32 %s1512_s13, 4 }
  0x11   : > { %200 = vrot.lane.b32.xlu1 %v1242_v0, %s1195_s19  ;;  %175 = vrot.lane.b32.xlu0 %v1242_v0, %s1196_s20  ;;  %vm1125_vm11 = vmpackc.low %vm602_vm10, %vm1287_vm7  ;;  %vm522_vm7 = vcmp.ge.s32.totalorder %v489_v18, %v1260_v5  ;;  %vm539_vm10 = vcmp.ge.s32.totalorder %v506_v20, %v1260_v5  ;;  %v510_v29 = vadd.s32 192, %v1266_v7  ;;  %v511_v30 = vadd.s32 200, %v1266_v7  ;;  %s172_s14 = scalar_lea.vmem %s1504_s3, %s1043_s9 }
  0x12   : > { %vm586_vm14 = vmand %vm520_vm8, %vm554_vm9  ;;  %1126 = vmatprep.subr.msk.bf16.mxu1 %vm1125_vm11, %v1205_v19  ;;  %vm573_vm11 = vcmp.lt.s32.totalorder %v506_v20, %v1262_v6  ;;  %v494_v31 = vadd.s32 64, %v1266_v7  ;;  %v495_v32 = vadd.s32 72, %v1266_v7  ;;  %v512_v33 = vadd.s32 208, %v1266_v7 }
  0x13   : > { %vm1127_vm1 = vmpackc.low %vm586_vm14, %vm1281_vm5  ;;  %vm556_vm5 = vcmp.lt.s32.totalorder %v489_v18, %v1262_v6  ;;  %vm574_vm14 = vcmp.lt.s32.totalorder %v507_v21, %v1262_v6  ;;  %v513_v34 = vadd.s32 216, %v1266_v7  ;;  %v496_v35 = vadd.s32 80, %v1266_v7 }
  0x14   : > { %1128 = vmatpush3.bf16.msk.msra.mxu1 %vm1127_vm1, %v1205_v19  ;;  %vm603_vm2 = vmand %vm537_vm12, %vm571_vm13  ;;  %vm540_vm13 = vcmp.ge.s32.totalorder %v507_v21, %v1260_v5  ;;  %vm523_vm1 = vcmp.ge.s32.totalorder %v490_v23, %v1260_v5  ;;  %v497_v36 = vadd.s32 88, %v1266_v7  ;;  %v514_v37 = vadd.s32 224, %v1266_v7 }
  0x15   : > { %202 = vrot.lane.b32.xlu1 %v1246_v1, %s1195_s19  ;;  %177 = vrot.lane.b32.xlu0 %v1246_v1, %s1196_s20  ;;  %vm604_vm6 = vmand %vm538_vm15, %vm572_vm0  ;;  %v515_v38 = vadd.s32 232, %v1266_v7  ;;  %v498_v39 = vadd.s32 96, %v1266_v7  ;;  %v499_v40 = vadd.s32 104, %v1266_v7  ;;  %v1390_v41 = vsub.s32 0, %v1266_v7 }
  0x16   : > { %vm1129_vm8 = vmpackc.low %vm604_vm6, %vm603_vm2  ;;  %vm557_vm2 = vcmp.lt.s32.totalorder %v490_v23, %v1262_v6  ;;  %vm558_vm6 = vcmp.lt.s32.totalorder %v491_v24, %v1262_v6  ;;  %v1393_v42 = vsub.s32 1, %v1266_v7 }
  0x17   : > { %1130 = vmatprep.subr.msk.bf16.mxu1 %vm1129_vm8, %v1205_v19  ;;  %vm587_vm9 = vmand %vm521_vm3, %vm555_vm4  ;;  %vm524_vm4 = vcmp.ge.s32.totalorder %v491_v24, %v1260_v5  ;;  %vm541_vm8 = vcmp.ge.s32.totalorder %v508_v25, %v1260_v5  ;;  %v213_v47 = vrot.slane %v994_v43, %v1390_v41  ;;  %v189_v48 = vrot.slane %v184_v44, %v1390_v41 }
  0x18   : > { %vm588_vm12 = vmand %vm522_vm7, %vm556_vm5  ;;  %v193_v49 = vrot.slane %v184_v44, %v1393_v42  ;;  %v217_v50 = vrot.slane %v994_v43, %v1393_v42  ;;  %v237_v9 = vrot.slane %v995_v59, %v1390_v41  ;;  %v241_v11 = vrot.slane %v995_v59, %v1393_v42  ;;  %v999_v43 = vld [vmem:[%s1503_s2 + $0x6] ss:$8 sm:$0x3] }
  0x19   : > { %226 = vrot.lane.b32.xlu1 %v1246_v1, %s1197_s21  ;;  %224 = vrot.lane.b32.xlu0 %v1242_v0, %s1197_s21  ;;  %vm1131_vm15 = vmpackc.low %vm588_vm12, %vm587_vm9  ;;  %vm575_vm9 = vcmp.lt.s32.totalorder %v508_v25, %v1262_v6  ;;  %vm576_vm12 = vcmp.lt.s32.totalorder %v509_v26, %v1262_v6  ;;  %v261_v12 = vrot.slane %v996_v62, %v1390_v41 }
  0x1a   : > { %1132 = vmatpush3.bf16.msk.msra.mxu1 %vm1131_vm15, %v1205_v19  ;;  %vm605_vm0 = vmand %vm539_vm10, %vm573_vm11  ;;  %vm542_vm11 = vcmp.ge.s32.totalorder %v509_v26, %v1260_v5  ;;  %vm525_vm15 = vcmp.ge.s32.totalorder %v492_v27, %v1260_v5  ;;  %v265_v13 = vrot.slane %v996_v62, %v1393_v42  ;;  %v282_v20 = vrot.slane %v997_v10, %v1393_v42 }
  0x1b   : > { %vm606_vm3 = vmand %vm540_vm13, %vm574_vm14  ;;  %v278_v21 = vrot.slane %v997_v10, %v1390_v41  ;;  %v302_v25 = vrot.slane %v998_v14, %v1390_v41  ;;  %v306_v26 = vrot.slane %v998_v14, %v1393_v42  ;;  %v501_v14 = vadd.s32 120, %v1266_v7 }
  0x1c   : > { %vm1133_vm7 = vmpackc.low %vm606_vm3, %vm605_vm0  ;;  %vm559_vm0 = vcmp.lt.s32.totalorder %v492_v27, %v1262_v6  ;;  %vm560_vm3 = vcmp.lt.s32.totalorder %v493_v28, %v1262_v6 }
  0x1d   : > { %250 = vrot.lane.b32.xlu1 %v1246_v1, %s1198_s22  ;;  %248 = vrot.lane.b32.xlu0 %v1242_v0, %s1198_s22  ;;  %vm589_vm5 = vmand %vm523_vm1, %vm557_vm2  ;;  %vm526_vm2 = vcmp.ge.s32.totalorder %v493_v28, %v1260_v5 }
  0x1e   : > { %1134 = vmatprep.subr.msk.bf16.mxu1 %vm1133_vm7, %v1205_v19  ;;  %vm590_vm10 = vmand %vm524_vm4, %vm558_vm6  ;;  %vm543_vm7 = vcmp.ge.s32.totalorder %v510_v29, %v1260_v5 }
  0x1f   : > { %vm1135_vm13 = vmpackc.low %vm590_vm10, %vm589_vm5  ;;  %vm577_vm5 = vcmp.lt.s32.totalorder %v510_v29, %v1262_v6  ;;  %vm578_vm10 = vcmp.lt.s32.totalorder %v511_v30, %v1262_v6 }
  0x20   : > { %1136 = vmatpush3.bf16.msk.msra.mxu1 %vm1135_vm13, %v1205_v19  ;;  %vm607_vm14 = vmand %vm541_vm8, %vm575_vm9  ;;  %vm544_vm9 = vcmp.ge.s32.totalorder %v511_v30, %v1260_v5  ;;  %vm527_vm13 = vcmp.ge.s32.totalorder %v494_v31, %v1260_v5 }
  0x21   : > { %291 = vrot.lane.b32.xlu1 %v1246_v1, %s1199_s23  ;;  %289 = vrot.lane.b32.xlu0 %v1242_v0, %s1199_s23  ;;  %vm608_vm1 = vmand %vm542_vm11, %vm576_vm12 }
  0x22   : > { %vm1137_vm4 = vmpackc.low %vm608_vm1, %vm607_vm14  ;;  %vm561_vm14 = vcmp.lt.s32.totalorder %v494_v31, %v1262_v6  ;;  %vm562_vm1 = vcmp.lt.s32.totalorder %v495_v32, %v1262_v6 }
  0x23   : > { %1138 = vmatprep.subr.msk.bf16.mxu1 %vm1137_vm4, %v1205_v19  ;;  %vm591_vm6 = vmand %vm525_vm15, %vm559_vm0  ;;  %vm528_vm0 = vcmp.ge.s32.totalorder %v495_v32, %v1260_v5  ;;  %vm545_vm4 = vcmp.ge.s32.totalorder %v512_v33, %v1260_v5 }
  0x24   : > { %vm592_vm8 = vmand %vm526_vm2, %vm560_vm3 }
  0x25   : > { %315 = vrot.lane.b32.xlu1 %v1246_v1, %s1200_s24  ;;  %313 = vrot.lane.b32.xlu0 %v1242_v0, %s1200_s24  ;;  %vm1139_vm11 = vmpackc.low %vm592_vm8, %vm591_vm6  ;;  %vm579_vm6 = vcmp.lt.s32.totalorder %v512_v33, %v1262_v6  ;;  %vm580_vm8 = vcmp.lt.s32.totalorder %v513_v34, %v1262_v6 }
  0x26   : > { %1140 = vmatpush3.bf16.msk.msra.mxu1 %vm1139_vm11, %v1205_v19  ;;  %vm609_vm12 = vmand %vm543_vm7, %vm577_vm5  ;;  %vm546_vm5 = vcmp.ge.s32.totalorder %v513_v34, %v1260_v5  ;;  %vm529_vm11 = vcmp.ge.s32.totalorder %v496_v35, %v1260_v5 }
  0x27   : > { %vm610_vm15 = vmand %vm544_vm9, %vm578_vm10 }
  0x28   : > { %vm1141_vm2 = vmpackc.low %vm610_vm15, %vm609_vm12  ;;  %vm563_vm12 = vcmp.lt.s32.totalorder %v496_v35, %v1262_v6  ;;  %vm564_vm15 = vcmp.lt.s32.totalorder %v497_v36, %v1262_v6  ;;  %v286_v35 = vmul.f32 %v282_v20, %v1246_v1 }
  0x29   : > { %339 = vrot.lane.b32.xlu1 %v1246_v1, %s1203_s25  ;;  %337 = vrot.lane.b32.xlu0 %v1242_v0, %s1203_s25  ;;  %vm593_vm3 = vmand %vm527_vm13, %vm561_vm14  ;;  %vm530_vm14 = vcmp.ge.s32.totalorder %v497_v36, %v1260_v5  ;;  %v285_v36 = vmul.f32 %v278_v21, %v1242_v0  ;;  %v722_v21 = vld [vmem:[%s1502_s1 + $0x20] sm:$0xff] }
  0x2a   : > { %1142 = vmatprep.subr.msk.bf16.mxu1 %vm1141_vm2, %v1205_v19  ;;  %vm594_vm7 = vmand %vm528_vm0, %vm562_vm1  ;;  %vm547_vm2 = vcmp.ge.s32.totalorder %v514_v37, %v1260_v5 }
  0x2b   : > { %vm1143_vm9 = vmpackc.low %vm594_vm7, %vm593_vm3  ;;  %vm581_vm3 = vcmp.lt.s32.totalorder %v514_v37, %v1262_v6  ;;  %vm582_vm7 = vcmp.lt.s32.totalorder %v515_v38, %v1262_v6 }
  0x2c   : > { %1144 = vmatpush3.bf16.msk.msra.mxu1 %vm1143_vm9, %v1205_v19  ;;  %vm611_vm10 = vmand %vm545_vm4, %vm579_vm6  ;;  %vm548_vm6 = vcmp.ge.s32.totalorder %v515_v38, %v1260_v5  ;;  %vm531_vm9 = vcmp.ge.s32.totalorder %v498_v39, %v1260_v5 }
  0x2d   : > { %363 = vrot.lane.b32.xlu1 %v1246_v1, %s1204_s26  ;;  %361 = vrot.lane.b32.xlu0 %v1242_v0, %s1204_s26  ;;  %vm612_vm13 = vmand %vm546_vm5, %vm580_vm8  ;;  %v1000_v1 = vld [vmem:[%s1503_s2 + $0x7] ss:$8 sm:$0x3]  ;;  %s1206_s26 = smov 120  }
  0x2e   : > { %vm1145_vm0 = vmpackc.low %vm612_vm13, %vm611_vm10  ;;  %vm565_vm10 = vcmp.lt.s32.totalorder %v498_v39, %v1262_v6  ;;  %vm566_vm13 = vcmp.lt.s32.totalorder %v499_v40, %v1262_v6 }
  0x2f   : > { %1146 = vmatprep.subr.msk.bf16.mxu1 %vm1145_vm0, %v1205_v19  ;;  %vm595_vm1 = vmand %vm529_vm11, %vm563_vm12  ;;  %vm532_vm12 = vcmp.ge.s32.totalorder %v499_v40, %v1260_v5 }
  0x30   : > { %vm596_vm4 = vmand %vm530_vm14, %vm564_vm15 }
  0x31   : > { %406 = vperm.xlu0 %1186, %v1314_v22   ;;  %vm1147_vm5 = vmpackc.low %vm596_vm4, %vm595_vm1  ;;  %vm228_vm4 = vcmp.lt.s32.totalorder %v1254_v3, 15 }
  0x32   : > { %1148 = vmatpush3.bf16.msk.msra.mxu1 %vm1147_vm5, %v1205_v19  ;;  %vm613_vm8 = vmand %vm547_vm2, %vm581_vm3  ;;  %vm204_vm2 = vcmp.lt.s32.totalorder %v1254_v3, 16  ;;  %vm181_vm3 = vcmp.lt.s32.totalorder %v1254_v3, 17  ;;  %vm317_vm5 = vcmp.lt.s32.totalorder %v1254_v3, 113 }
  0x33   : > { %vm614_vm11 = vmand %vm548_vm6, %vm582_vm7  ;;  %vm252_vm6 = vcmp.lt.s32.totalorder %v1254_v3, 1  ;;  %vm293_vm7 = vcmp.lt.s32.totalorder %v1254_v3, 127 }
  0x34   : > { %vm1149_vm0 = vmpackc.low %vm614_vm11, %vm613_vm8  ;;  %vm341_vm8 = vcmp.lt.s32.totalorder %v1254_v3, 112 }
  0x35   : > { %1150 = vmatprep.subr.msk.bf16.mxu1 %vm1149_vm0, %v1205_v19  ;;  %vm597_vm14 = vmand %vm531_vm9, %vm565_vm10  ;;  %vm365_vm9 = vcmp.lt.s32.totalorder %v1254_v3, 111  ;;  %vm409_vm10 = vcmask 588800   ;;  %v516_v3 = vadd.s32 240, %v1266_v7 }
  0x36   : > { %vm598_vm15 = vmand %vm532_vm12, %vm566_vm13 }
  0x37   : > { %vm1151_vm1 = vmpackc.low %vm598_vm15, %vm597_vm14  ;;  %vm549_vm11 = vcmp.ge.s32.totalorder %v516_v3, %v1260_v5  ;;  %vm583_vm13 = vcmp.lt.s32.totalorder %v516_v3, %v1262_v6 }
  0x38   : > { %1152 = vmatpush3.bf16.msk.msra.mxu1 %vm1151_vm1, %v1205_v19  ;;  %vm615_vm14 = vmand %vm549_vm11, %vm583_vm13  ;;  %vm927_vm11 = vcmask 7168  }
  0x83   : > { %v201_v45 = vpop.permute.xlu1 %200  ;;  %v176_v46 = vpop.permute.xlu0 %175 }
  0x87   : > { %v203_v51 = vpop.permute.xlu1 %202  ;;  %v178_v52 = vpop.permute.xlu0 %177 }
  0x88   : > { %v205_v53 = vsel %vm204_vm2, %v201_v45, %v203_v51  ;;  %v206_v54 = vsel %vm204_vm2, %v203_v51, %v201_v45  ;;  %v182_v55 = vsel %vm181_vm3, %v176_v46, %v178_v52  ;;  %v183_v56 = vsel %vm181_vm3, %v178_v52, %v176_v46  ;;  %v1001_v51 = vld [vmem:[%s1503_s2 + $0x10] ss:$8 sm:$0x3] }
  0x89   : > { %v220_v57 = vmul.f32 %v213_v47, %v206_v54  ;;  %v196_v58 = vmul.f32 %v189_v48, %v183_v56  ;;  %v197_v60 = vmul.f32 %v193_v49, %v182_v55  ;;  %v221_v61 = vmul.f32 %v217_v50, %v205_v53 }
  0x8a   : > { %v326_v47 = vrot.slane %v999_v43, %v1390_v41  ;;  %v330_v48 = vrot.slane %v999_v43, %v1393_v42  ;;  %v350_v49 = vrot.slane %v1000_v1, %v1390_v41  ;;  %v354_v50 = vrot.slane %v1000_v1, %v1393_v42 }
  0x8b   : > { %v227_v63 = vpop.permute.xlu1 %226  ;;  %v225_v2 = vpop.permute.xlu0 %224  ;;  %v1109_v4 = vpack.c.bf16 %v221_v61, %v197_v60  ;;  %v1111_v8 = vpack.c.bf16 %v220_v57, %v196_v58  ;;  %v378_v58 = vrot.slane %v1001_v51, %v1393_v42  ;;  %v517_v42 = vadd.s32 248, %v1266_v7 }
  0x8c   : > { %v229_v15 = vsel %vm228_vm4, %v225_v2, %v227_v63  ;;  %v230_v16 = vsel %vm228_vm4, %v227_v63, %v225_v2  ;;  %v374_v63 = vrot.slane %v1001_v51, %v1390_v41  ;;  %v500_v41 = vadd.s32 112, %v1266_v7 }
  0x8d   : > { %1110 = vmatprep.subr.bf16.mxu0 %v1109_v4  ;;  %v244_v27 = vmul.f32 %v237_v9, %v230_v16  ;;  %v245_v28 = vmul.f32 %v241_v11, %v229_v15  ;;  %vm550_vm12 = vcmp.ge.s32.totalorder %v517_v42, %v1260_v5  ;;  %vm584_vm0 = vcmp.lt.s32.totalorder %v517_v42, %v1262_v6 }
  0x8e   : > { %1112 = vmatpush1.bf16.msra.mxu0 %v1111_v8  ;;  %vm533_vm15 = vcmp.ge.s32.totalorder %v500_v41, %v1260_v5  ;;  %vm567_vm1 = vcmp.lt.s32.totalorder %v500_v41, %v1262_v6  ;;  %vm616_vm2 = vmand %vm550_vm12, %vm584_vm0  ;;  %vm534_vm3 = vcmp.ge.s32.totalorder %v501_v14, %v1260_v5  ;;  %vm568_vm4 = vcmp.lt.s32.totalorder %v501_v14, %v1262_v6  ;;  %v719_v5 = vld [vmem:[%s1502_s1 + $0x8] sm:$0xff]  ;;  %v721_v6 = vld [vmem:[%s1502_s1 + $0x18] sm:$0xff] }
  0x8f   : > { %v251_v17 = vpop.permute.xlu1 %250  ;;  %v249_v18 = vpop.permute.xlu0 %248  ;;  %729 = vrot.lane.b32.xlu1 %v719_v5, %s1206_s26  ;;  %733 = vrot.lane.b32.xlu0 %v721_v6, %s1206_s26 }
  0x90   : > { %v253_v23 = vsel %vm252_vm6, %v249_v18, %v251_v17  ;;  %v254_v24 = vsel %vm252_vm6, %v251_v17, %v249_v18  ;;  %vm1153_vm6 = vmpackc.low %vm616_vm2, %vm615_vm14 }
  0x91   : > { %v268_v29 = vmul.f32 %v261_v12, %v254_v24  ;;  %v269_v30 = vmul.f32 %v265_v13, %v253_v23  ;;  %1154 = vmatprep.subr.msk.bf16.mxu1 %vm1153_vm6, %v1205_v19 }
  0x93   : > { %v292_v31 = vpop.permute.xlu1 %291  ;;  %v290_v32 = vpop.permute.xlu0 %289  ;;  %v1113_v33 = vpack.c.bf16 %v269_v30, %v245_v28  ;;  %v1115_v34 = vpack.c.bf16 %v268_v29, %v244_v27  ;;  %v724_v27 = vld [vmem:[%s1502_s1 + $0x30] sm:$0xff] }
  0x94   : > { %v294_v37 = vsel %vm293_vm7, %v290_v32, %v292_v31  ;;  %v295_v38 = vsel %vm293_vm7, %v292_v31, %v290_v32  ;;  %vm599_vm7 = vmand %vm533_vm15, %vm567_vm1 }
  0x95   : > { %v309_v39 = vmul.f32 %v302_v25, %v294_v37  ;;  %v310_v40 = vmul.f32 %v306_v26, %v295_v38  ;;  %1114 = vmatprep.subr.bf16.mxu0 %v1113_v33  ;;  %v723_v26 = vld [vmem:[%s1502_s1 + $0x28] sm:$0xff] }
  0x96   : > { %1116 = vmatpush1.bf16.msra.mxu0 %v1115_v34  ;;  %841 = vrot.lane.b32.xlu0 %v723_v26, %s1207_s8 }
  0x97   : > { %v316_v44 = vpop.permute.xlu1 %315  ;;  %v314_v0 = vpop.permute.xlu0 %313  ;;  %v1117_v45 = vpack.c.bf16 %v310_v40, %v286_v35  ;;  %v1119_v46 = vpack.c.bf16 %v309_v39, %v285_v36 }
  0x98   : > { %v318_v52 = vsel %vm317_vm5, %v314_v0, %v316_v44  ;;  %v319_v53 = vsel %vm317_vm5, %v316_v44, %v314_v0  ;;  %vm600_vm5 = vmand %vm534_vm3, %vm568_vm4 }
  0x99   : > { %1118 = vmatprep.subr.bf16.mxu0 %v1117_v45  ;;  %v333_v59 = vmul.f32 %v326_v47, %v318_v52  ;;  %v334_v60 = vmul.f32 %v330_v48, %v319_v53 }
  0x9a   : > { %1120 = vmatpush1.bf16.msra.mxu0 %v1119_v46 }
  0x9b   : > { %v340_v54 = vpop.permute.xlu1 %339  ;;  %v338_v55 = vpop.permute.xlu0 %337 }
  0x9c   : > { %v342_v56 = vsel %vm341_vm8, %v338_v55, %v340_v54  ;;  %v343_v57 = vsel %vm341_vm8, %v340_v54, %v338_v55  ;;  %vm1155_vm8 = vmpackc.low %vm600_vm5, %vm599_vm7 }
  0x9d   : > { %v357_v61 = vmul.f32 %v350_v49, %v342_v56  ;;  %v358_v62 = vmul.f32 %v354_v50, %v343_v57  ;;  %1156 = vmatpush3.bf16.msk.msra.mxu1 %vm1155_vm8, %v1205_v19  ;;  %v720_v19 = vld [vmem:[%s1502_s1 + $0x10] sm:$0xff] }
  0x9e   : > { %731 = vrot.lane.b32.xlu1 %v720_v19, %s1206_s26 }
  0x9f   : > { %v364_v2 = vpop.permute.xlu1 %363  ;;  %v362_v4 = vpop.permute.xlu0 %361  ;;  %v1121_v8 = vpack.c.bf16 %v358_v62, %v334_v60  ;;  %v1123_v9 = vpack.c.bf16 %v357_v61, %v333_v59 }
  0xa0   : > { %v366_v10 = vsel %vm365_vm9, %v362_v4, %v364_v2  ;;  %v367_v11 = vsel %vm365_vm9, %v364_v2, %v362_v4  ;;  %vm741_vm9 = vcmask 64512  }
  0xa1   : > { %v382_v12 = vmul.f32 %v378_v58, %v367_v11  ;;  %1122 = vmatprep.subr.bf16.mxu0 %v1121_v8  ;;  %v381_v13 = vmul.f32 %v374_v63, %v366_v10 }
  0xa2   : > { %1124 = vmatpush1.bf16.msra.mxu0 %v1123_v9  ;;  %735 = vrot.lane.b32.xlu1 %v722_v21, %s1206_s26 }
  0xa3   : > { %428 = vmatprep.subr.mxu0 %v382_v12 }
  0xa6   : > { %429 = vmatpush1.msra.mxu0 %v381_v13  ;;  %843 = vrot.lane.b32.xlu1 %v724_v27, %s1207_s8 }
  0xa7   : > { %1002 = vmatmul.mubr.msk.f32.vlgmr.msra.gmra.mrb[0].mxu0 %vm409_vm10, %v1314_v22  ;;  %vm847_vm10 = vcmask 261120  }
  0xa8   : > { %1092 = vmatprep.mubr.msk.f32.mxu0 %vm741_vm9, %v719_v5 }
  0xb0   : > { %v407_v7 = vpop.permute.xlu0 %406 }
 0x101   : > { %v730_v28 = vpop.permute.xlu1 %729  ;;  %v734_v36 = vpop.permute.xlu0 %733 }
 0x108   : > { %v842_v47 = vpop.permute.xlu0 %841 }
 0x110   : > { %v732_v29 = vpop.permute.xlu1 %731 }
 0x114   : > { %v736_v34 = vpop.permute.xlu1 %735 }
 0x118   : > { %v844_v46 = vpop.permute.xlu1 %843 }
 0x17a   : > { %v478_v22 = vpop.f32.mrb[0].mxu0 }
 0x17b   : > { %v479_v15 = vadd.f32 %v478_v22, %v407_v7  ;;  %v480_v16 = vpop.f32.mrb[1].mxu0 }
 0x17c   : > { %v481_v17 = vadd.f32 %v480_v16, %v407_v7 }
 0x17d   : > { %v483_v20 = vmax.f32 %v479_v15, 0.0 }
 0x17e   : > { %v484_v18 = vmax.f32 %v481_v17, 0.0 }
 0x180   : > { %713 = vmatprep.mubr.f32.mxu1 %v484_v18 }
 0x181   : > { %714 = vmatmul.mubr.f32.vlgmr.msra.gmra.mrb[0].mxu1 %v483_v20 }
 0x254   : > { %v1076_v23 = vpop.f32.mrb[0].mxu1 }
 0x255   : > { %v1077_v24 = vpop.f32.mrb[1].mxu1 }
 0x256   : > { %v1078_v25 = vadd.f32 %v1077_v24, %v1076_v23 }
 0x258   : > { %1090 = vmatprep.subr.mxu0 %v1078_v25 }
 0x259   : > { %1091 = vmatpush3.msra.mxu0 %v1078_v25 }
 0x25a   : > { %1093 = vmatmul.mubr.msk.f32.vlgmr.msra.gmra.mrb[2].mxu0 %vm741_vm9, %v720_v19 }
 0x25b   : > { %1095 = vmatprep.mubr.msk.f32.mxu0 %vm741_vm9, %v721_v6 }
 0x25e   : > { %1096 = vmatmul.mubr.msk.f32.gmra.mrb[4].mxu0 %vm741_vm9, %v722_v21 }
 0x25f   : > { %1106 = vmatprep.mubr.msk.f32.mxu0 %vm847_vm10, %v723_v26 }
 0x32d   : > { %v1094_v30 = vpop.f32.mrb[2].mxu0 }
 0x32e   : > { %v822_v31 = vadd.f32 %v1094_v30, %v732_v29  ;;  %v816_v32 = vpop.f32.mrb[3].mxu0 }
 0x32f   : > { %v817_v33 = vadd.f32 %v816_v32, %v730_v28 }
 0x330   : > { %v836_v35 = vmax.f32 %v822_v31, 0.0 }
 0x331   : > { %v835_v37 = vmax.f32 %v817_v33, 0.0  ;;  %v1097_v38 = vpop.f32.mrb[4].mxu0 }
 0x332   : > { %v832_v39 = vadd.f32 %v1097_v38, %v736_v34  ;;  %v826_v40 = vpop.f32.mrb[5].mxu0 }
 0x333   : > { %v1157_v43 = vpack.c.bf16 %v836_v35, %v835_v37  ;;  %v827_v1 = vadd.f32 %v826_v40, %v734_v36 }
 0x334   : > { %v838_v44 = vmax.f32 %v832_v39, 0.0 }
 0x335   : > { %v837_v0 = vmax.f32 %v827_v1, 0.0  ;;  %1158 = vmatprep.subr.bf16.mxu0 %v1157_v43 }
 0x336   : > { %1160 = vmatpush3.bf16.msra.mxu0 %v1157_v43 }
 0x337   : > { %v1161_v45 = vpack.c.bf16 %v838_v44, %v837_v0 }
 0x339   : > { %1162 = vmatprep.subr.bf16.mxu0 %v1161_v45 }
 0x33a   : > { %1164 = vmatpush3.bf16.msra.mxu0 %v1161_v45 }
 0x33d   : > { %1107 = vmatmul.mubr.msk.f32.vlgmr.msra.gmra.mrb[6].mxu0 %vm847_vm10, %v724_v27 }
 0x410   : > { %v1108_v48 = vpop.f32.mrb[6].mxu0 }
 0x411   : > { %v924_v49 = vadd.f32 %v1108_v48, %v844_v46  ;;  %v918_v50 = vpop.f32.mrb[7].mxu0 }
 0x412   : > { %v919_v51 = vadd.f32 %v918_v50, %v842_v47 }
 0x413   : > { %929 = vst.msk [vmem:[%s172_s14 + $0x8] sm:$0xff] %vm927_vm11, %v924_v49 }
 0x414   : > { %928 = vst.msk [vmem:[%s172_s14] sm:$0xff] %vm927_vm11, %v919_v51 }
 0x415 PF: > { %s13_s12 = sadd.s32 1, %s1193_s12  }
 0x416   : > { %p10_p5 = scmp.ge.s32.totalorder %s13_s12, 4  }
 0x418   :  { %12 = sbr.rel (!%p10_p5) target bundleno = 1 (0x1), region = 70 }

</bundles_post_ra>
